<compile_context>
chip_gen: v7x
topology: tpu7x:2x2x1
jax: 0.10.0
libtpu: 0.0.40
codegen_flags: <defaults>
</compile_context>

<pallas_src>
from functools import partial

import jax
import jax.numpy as jnp
from jax.experimental import pallas as pl
from jax.experimental.pallas import tpu as pltpu

_LANES = 128


def _round_up(v, m):
    return (v + m - 1) // m * m


def _vmem_capacity_bytes():
    """Per-generation VMEM capacity (128 MiB v5e/v6e, 64 MiB v7x); conservative fallback."""
    try:
        info = pltpu.get_tpu_info()
        cap = getattr(info, "vmem_capacity_bytes", None)
        if cap:
            return int(cap)
    except Exception:
        pass
    return 64 * 1024 * 1024


def _estimate_vmem_bytes(bblk, N, Cin, Hp, Cp, Cout, adj_bytes):
    """Rough per-grid-step VMEM footprint (double-buffered blocks + f32 temporaries)."""
    lp = lambda c: _round_up(max(int(c), 1), _LANES)   # lane padding of last dim
    sp = lambda r: _round_up(max(int(r), 1), 8)        # sublane padding
    n_s = sp(N)
    mn = bblk * n_s
    b = 0
    # double-buffered streamed blocks
    b += 2 * bblk * n_s * lp(N) * adj_bytes            # adj
    b += 2 * mn * lp(Cin) * 4                          # x
    b += 2 * 2 * mn * lp(1) * 4                        # inv_deg + mask (lane-pad to 128)
    b += 2 * mn * lp(Cout) * 4                         # out block (lane-padded in VMEM)
    # grid-invariant weights (still double-buffered by the pipeline)
    b += 2 * (2 * sp(Cin) * Hp + sp(1) * Hp + sp(Hp) * 2 * Cp + sp(1) * Cp) * 4
    # in-kernel f32 temporaries (worst case = exact-f32 aggregation path)
    b += bblk * n_s * lp(N) * 4                        # adj upcast feeding one MXU op
    b += mn * lp(Cin) * 4                              # agg1
    b += mn * Hp * 4                                   # h
    b += mn * 2 * Cp * 4                               # [rel | root]
    b += 2 * mn * Cp * 4                               # agg2 / pre-slice out
    return b


def _pick_bblk(B, N, Cin, Hp, Cp, Cout, adj_bytes, budget_bytes):
    """Largest batch block that fits the VMEM budget; keep >= 2 grid steps when possible."""
    best = 1
    for cand in range(1, B + 1):
        if _estimate_vmem_bytes(cand, N, Cin, Hp, Cp, Cout, adj_bytes) <= budget_bytes:
            best = cand
    # >= 2 grid steps: lets dimension_semantics=("parallel",) shard the batch axis across
    # v7x's two TensorCores and gives the pipeline something to double-buffer against.
    if best >= B and B > 1:
        best = (B + 1) // 2
    return best


def _diffconv_kernel(x_ref, adj_ref, invdeg_ref, mask_ref,
                     w1r_ref, w1o_ref, b1_ref, w2_ref, b2_ref,
                     o_ref, *, agg_in_bf16):
    bblk, n, cin = x_ref.shape
    cp = b2_ref.shape[1]
    cout = o_ref.shape[2]
    mm_dtype = jnp.bfloat16 if agg_in_bf16 else jnp.float32

    x = x_ref[...]                        # (bblk, n, cin) f32
    inv_deg = invdeg_ref[...]             # (bblk, n, 1)  f32  = 1 / clamp(deg, 1)
    m = mask_ref[...]                     # (bblk, n, 1)  f32
    m2d = m.reshape(bblk * n, 1)

    def mean_agg(dense):
        # (adj @ dense) * inv_deg.  adj is read narrow and converted (no-op on the bf16
        # fast path) as it feeds this single MXU op, so no adj copy outlives the call.
        adj = adj_ref[...].astype(mm_dtype)
        prod = jnp.einsum('bij,bjc->bic', adj, dense.astype(mm_dtype),
                          preferred_element_type=jnp.float32)
        return prod * inv_deg

    # ---- conv1: h = relu(mask * (mean_agg(x) @ W1_rel + x @ W1_root + b1)) ----
    # Two accumulated dots instead of concat([agg, x]) @ fused-weights: avoids a
    # lane-offset relayout + VMEM copy (same single MXU contraction pass at Cin << 128).
    agg1_2d = mean_agg(x).reshape(bblk * n, cin)
    x_2d = x.reshape(bblk * n, cin)
    h2d = (jnp.dot(agg1_2d, w1r_ref[...], preferred_element_type=jnp.float32)
           + jnp.dot(x_2d, w1o_ref[...], preferred_element_type=jnp.float32)
           + b1_ref[...])                                              # (bblk*n, Hp)
    h2d = jnp.maximum(h2d * m2d, 0.0)

    # ---- conv2 (reassociated): relu(mask * (mean_agg(h @ W2_rel) + h @ W2_root + b2))
    t = jnp.dot(h2d, w2_ref[...], preferred_element_type=jnp.float32)  # (bblk*n, 2*Cp)
    rel = t[:, :cp].reshape(bblk, n, cp)      # h @ W2_rel  (split at a 128-lane boundary)
    root = t[:, cp:].reshape(bblk, n, cp)     # h @ W2_root
    out = mean_agg(rel) + root + b2_ref[...]
    out = jnp.maximum(out * m, 0.0)
    # Narrow (unpadded) HBM store: masked vst, but 16x fewer writeback bytes at Cout=8.
    o_ref[...] = out[..., :cout].astype(o_ref.dtype)


def _prepare_params(params, Hp, Cp):
    """Zero-pad weights/biases to lane-dense matmul widths (padded lanes stay exactly 0)."""
    w1r, w1o, b1, w2r, w2o, b2 = params
    H = w1r.shape[1]
    Cout = w2r.shape[1]
    pad_h, pad_c = Hp - H, Cp - Cout

    w1r_p = jnp.pad(w1r, ((0, 0), (0, pad_h)))                       # (Cin, Hp)
    w1o_p = jnp.pad(w1o, ((0, 0), (0, pad_h)))                       # (Cin, Hp)
    b1_p = jnp.pad(b1.reshape(1, H), ((0, 0), (0, pad_h)))           # (1, Hp)

    w2_p = jnp.concatenate(
        [jnp.pad(w2r, ((0, pad_h), (0, pad_c))),
         jnp.pad(w2o, ((0, pad_h), (0, pad_c)))], axis=1)            # (Hp, 2*Cp)
    b2_p = jnp.pad(b2.reshape(1, Cout), ((0, 0), (0, pad_c)))        # (1, Cp)
    return w1r_p, w1o_p, b1_p, w2_p, b2_p


def diff_conv_block(x, adj, mask, params, *, agg_matmul_dtype=jnp.float32):
    """Fused DiffConvBlock forward.

    x    : (B, N, C_in)  float32
    adj  : (B, N, N)     0/1 dense adjacency; bf16 recommended (exact for 0/1, halves HBM
                         traffic).  int8 (v5e) / fp8 (v7x) storage also works unchanged.
    mask : (B, N, 1)     float32
    params = (W1_rel^T, W1_root^T, b1, W2_rel^T, W2_root^T, b2), weights stored (in, out).
    agg_matmul_dtype : dtype of the two N^2 adjacency matmuls.  float32 (default) is
        bit-exact vs. the f32 module; bfloat16 runs them at native bf16 MXU rate with no
        f32 adj temporary (numerics change ~1e-3 relative -- flagged per review).
    Returns (B, N, C_out) float32.
    """
    B, N, Cin = x.shape
    H = params[0].shape[1]
    Cout = params[3].shape[1]
    Hp = _round_up(H, _LANES)
    Cp = _round_up(Cout, _LANES)
    adj_bytes = jnp.dtype(adj.dtype).itemsize

    # Per-generation block sizing from an explicit VMEM budget.
    cap = _vmem_capacity_bytes()
    budget = int(cap * 0.45)
    bblk = _pick_bblk(B, N, Cin, Hp, Cp, Cout, adj_bytes, budget)

    # Pad B up to a multiple of bblk (instead of degrading bblk for odd/prime B).
    B_pad = _round_up(B, bblk)
    if B_pad != B:
        pad = ((0, B_pad - B), (0, 0), (0, 0))
        x = jnp.pad(x, pad)
        adj = jnp.pad(adj, pad)
        mask = jnp.pad(mask, pad)

    # Degree normalization precomputed once in f32 (exact even with narrow adj storage);
    # removes the per-step cross-lane reduction over N from the kernel.
    deg = jnp.sum(adj.astype(jnp.float32), axis=-1, keepdims=True)
    inv_deg = 1.0 / jnp.maximum(deg, 1.0)

    w1r_p, w1o_p, b1_p, w2_p, b2_p = _prepare_params(params, Hp, Cp)

    est = _estimate_vmem_bytes(bblk, N, Cin, Hp, Cp, Cout, adj_bytes)
    vmem_limit = int(min(int(cap * 0.95), max(est + (8 << 20), 32 << 20)))

    agg_in_bf16 = jnp.dtype(agg_matmul_dtype) == jnp.dtype(jnp.bfloat16)
    kernel = partial(_diffconv_kernel, agg_in_bf16=agg_in_bf16)

    grid = (B_pad // bblk,)

    # TODO(synk): for very large N the (bblk, N, N) adj block must be row-tiled (VMEM),
    # which requires splitting the two convs into two pallas_calls since conv2 aggregates
    # over h of *all* nodes; unnecessary at these sizes.
    # TODO(synk): per-generation adj storage (int8 on v5e, fp8 e4m3 on v7x) and
    # pipeline_mode=pl.Buffered(3) on the adj stream (v6e, if DMA is exposed) are further
    # options once VMEM headroom is confirmed on hardware.
    out = pl.pallas_call(
        kernel,
        out_shape=jax.ShapeDtypeStruct((B_pad, N, Cout), x.dtype),
        grid_spec=pltpu.PrefetchScalarGridSpec(
            num_scalar_prefetch=0,
            grid=grid,
            in_specs=[
                pl.BlockSpec((bblk, N, Cin), lambda i: (i, 0, 0)),   # x
                pl.BlockSpec((bblk, N, N), lambda i: (i, 0, 0)),     # adj (narrow dtype)
                pl.BlockSpec((bblk, N, 1), lambda i: (i, 0, 0)),     # inv_deg (f32)
                pl.BlockSpec((bblk, N, 1), lambda i: (i, 0, 0)),     # mask
                pl.BlockSpec((Cin, Hp), lambda i: (0, 0)),           # W1_rel (padded)
                pl.BlockSpec((Cin, Hp), lambda i: (0, 0)),           # W1_root (padded)
                pl.BlockSpec((1, Hp), lambda i: (0, 0)),             # b1 (padded)
                pl.BlockSpec((Hp, 2 * Cp), lambda i: (0, 0)),        # [W2_rel | W2_root]
                pl.BlockSpec((1, Cp), lambda i: (0, 0)),             # b2 (padded)
            ],
            out_specs=pl.BlockSpec((bblk, N, Cout), lambda i: (i, 0, 0)),
        ),
        compiler_params=pltpu.CompilerParams(
            dimension_semantics=("parallel",),
            vmem_limit_bytes=vmem_limit),
    )(x, adj, inv_deg, mask, w1r_p, w1o_p, b1_p, w2_p, b2_p)

    return out[:B]


def _reference(x, adj, mask, params):
    w1r, w1o, b1, w2r, w2o, b2 = params
    adj = adj.astype(jnp.float32)
    deg = jnp.maximum(jnp.sum(adj, axis=-1, keepdims=True), 1.0)

    agg = jnp.einsum('bij,bjc->bic', adj, x) / deg
    h = agg @ w1r + x @ w1o + b1
    h = h * mask
    h = jax.nn.relu(h)

    agg2 = jnp.einsum('bij,bjc->bic', adj, h) / deg
    out = agg2 @ w2r + h @ w2o + b2
    out = out * mask
    return jax.nn.relu(out)


if __name__ == "__main__":
    key = jax.random.PRNGKey(0)
    B, N = 2, 16
    Cin, H, Cout = 4, 32, 8

    kx, ka, km, k1, k2, k3, k4, k5, k6 = jax.random.split(key, 9)

    x = jax.random.normal(kx, (B, N, Cin), dtype=jnp.float32)

    # symmetric dense 0/1 adjacency; kernel input stored in bf16 (exact for 0/1).
    a = (jax.random.uniform(ka, (B, N, N)) > 0.5).astype(jnp.float32)
    adj_f32 = jnp.maximum(a, jnp.transpose(a, (0, 2, 1)))
    adj_bf16 = adj_f32.astype(jnp.bfloat16)

    # mask: first 12 nodes valid in batch 0, first 9 in batch 1
    valid = jnp.array([12, 9])
    mask = (jnp.arange(N)[None, :] < valid[:, None]).astype(jnp.float32)[..., None]

    # Deterministic parameter init (Linear weights stored pre-transposed as (in, out)).
    scale1 = 1.0 / jnp.sqrt(Cin)
    scale2 = 1.0 / jnp.sqrt(H)
    w1_rel = jax.random.uniform(k1, (Cin, H), minval=-scale1, maxval=scale1)
    w1_root = jax.random.uniform(k2, (Cin, H), minval=-scale1, maxval=scale1)
    b1 = jax.random.uniform(k3, (H,), minval=-scale1, maxval=scale1)
    w2_rel = jax.random.uniform(k4, (H, Cout), minval=-scale2, maxval=scale2)
    w2_root = jax.random.uniform(k5, (H, Cout), minval=-scale2, maxval=scale2)
    b2 = jax.random.uniform(k6, (Cout,), minval=-scale2, maxval=scale2)

    params = (w1_rel, w1_root, b1, w2_rel, w2_root, b2)

    ref = _reference(x, adj_f32, mask, params)

    # Exact path (default): f32 aggregation matmuls, matches the module tightly.
    out = jax.block_until_ready(
        diff_conv_block(x, adj_bf16, mask, params, agg_matmul_dtype=jnp.float32))
    assert out.shape == (B, N, Cout)
    assert jnp.allclose(out, ref, atol=1e-4, rtol=1e-4), "exact path mismatch vs reference"

    # Review-recommended fast path: N^2 matmuls at native bf16 MXU rate (numerics ~1e-3).
    out_fast = jax.block_until_ready(
        diff_conv_block(x, adj_bf16, mask, params, agg_matmul_dtype=jnp.bfloat16))
    assert jnp.allclose(out_fast, ref, atol=5e-2, rtol=5e-2), "bf16 path mismatch vs reference"

    print("KERNEL_OK")
</pallas_src>

<mosaic_0001>
module attributes {stable_mosaic.version = 11 : i64} {
  func.func @_diffconv_kernel(%arg0: i32, %arg1: memref<1x16x4xf32, #tpu.memory_space<vmem>>, %arg2: memref<1x16x16xbf16, #tpu.memory_space<vmem>>, %arg3: memref<1x16x1xf32, #tpu.memory_space<vmem>>, %arg4: memref<1x16x1xf32, #tpu.memory_space<vmem>>, %arg5: memref<4x128xf32, #tpu.memory_space<vmem>>, %arg6: memref<4x128xf32, #tpu.memory_space<vmem>>, %arg7: memref<1x128xf32, #tpu.memory_space<vmem>>, %arg8: memref<128x256xf32, #tpu.memory_space<vmem>>, %arg9: memref<1x128xf32, #tpu.memory_space<vmem>>, %arg10: memref<1x16x8xf32, #tpu.memory_space<vmem>>) attributes {dimension_semantics = [#tpu.dimension_semantics<parallel>], iteration_bounds = array<i64: 2>, scalar_prefetch = 0 : i64, scratch_operands = 0 : i64, tpu.core_type = #tpu.core_type<tc>, window_params = [{transform_indices = @transform_0, window_bounds = array<i64: 1, 16, 4>}, {transform_indices = @transform_1, window_bounds = array<i64: 1, 16, 16>}, {transform_indices = @transform_2, window_bounds = array<i64: 1, 16, 1>}, {transform_indices = @transform_3, window_bounds = array<i64: 1, 16, 1>}, {pipeline_mode = #tpu.pipeline_mode<synchronous>, transform_indices = @transform_4, window_bounds = array<i64: 4, 128>}, {pipeline_mode = #tpu.pipeline_mode<synchronous>, transform_indices = @transform_5, window_bounds = array<i64: 4, 128>}, {pipeline_mode = #tpu.pipeline_mode<synchronous>, transform_indices = @transform_6, window_bounds = array<i64: 1, 128>}, {pipeline_mode = #tpu.pipeline_mode<synchronous>, transform_indices = @transform_7, window_bounds = array<i64: 128, 256>}, {pipeline_mode = #tpu.pipeline_mode<synchronous>, transform_indices = @transform_8, window_bounds = array<i64: 1, 128>}, {transform_indices = @transform_9, window_bounds = array<i64: 1, 16, 8>}]} {
    %c0 = arith.constant 0 : index
    %c0_0 = arith.constant 0 : index
    %c0_1 = arith.constant 0 : index
    %0 = vector.load %arg1[%c0, %c0_0, %c0_1] : memref<1x16x4xf32, #tpu.memory_space<vmem>>, vector<1x16x4xf32>
    %c0_2 = arith.constant 0 : index
    %c0_3 = arith.constant 0 : index
    %c0_4 = arith.constant 0 : index
    %1 = vector.load %arg3[%c0_2, %c0_3, %c0_4] : memref<1x16x1xf32, #tpu.memory_space<vmem>>, vector<1x16x1xf32>
    %c0_5 = arith.constant 0 : index
    %c0_6 = arith.constant 0 : index
    %c0_7 = arith.constant 0 : index
    %2 = vector.load %arg4[%c0_5, %c0_6, %c0_7] : memref<1x16x1xf32, #tpu.memory_space<vmem>>, vector<1x16x1xf32>
    %3 = vector.shape_cast %2 : vector<1x16x1xf32> to vector<16x1xf32>
    %c0_8 = arith.constant 0 : index
    %c0_9 = arith.constant 0 : index
    %c0_10 = arith.constant 0 : index
    %4 = vector.load %arg2[%c0_8, %c0_9, %c0_10] : memref<1x16x16xbf16, #tpu.memory_space<vmem>>, vector<1x16x16xbf16>
    %5 = arith.extf %4 : vector<1x16x16xbf16> to vector<1x16x16xf32>
    "tpu.trace_start"() <{level = 10 : i32, message = "bij,bjc->bic"}> : () -> ()
    %cst = arith.constant dense<0.000000e+00> : vector<1x16x4xf32>
    %6 = tpu.matmul %5, %0, %cst {dimension_numbers = #tpu.dot_dimension_numbers<[2], [1], [1], [2], [0, 0, 0, 1, 1, 2], [0], [0]>} : vector<1x16x16xf32>, vector<1x16x4xf32>, vector<1x16x4xf32> -> vector<1x16x4xf32>
    "tpu.trace_stop"() : () -> ()
    %7 = vector.broadcast %1 : vector<1x16x1xf32> to vector<1x16x4xf32>
    %8 = arith.mulf %6, %7 : vector<1x16x4xf32>
    %9 = vector.shape_cast %8 : vector<1x16x4xf32> to vector<16x4xf32>
    %10 = vector.shape_cast %0 : vector<1x16x4xf32> to vector<16x4xf32>
    %c0_11 = arith.constant 0 : index
    %c0_12 = arith.constant 0 : index
    %11 = vector.load %arg5[%c0_11, %c0_12] : memref<4x128xf32, #tpu.memory_space<vmem>>, vector<4x128xf32>
    %cst_13 = arith.constant dense<0.000000e+00> : vector<16x128xf32>
    %12 = tpu.matmul %9, %11, %cst_13 {dimension_numbers = #tpu.dot_dimension_numbers<[1], [0], [0], [1], [0, 0, 1, 1], [], []>} : vector<16x4xf32>, vector<4x128xf32>, vector<16x128xf32> -> vector<16x128xf32>
    %c0_14 = arith.constant 0 : index
    %c0_15 = arith.constant 0 : index
    %13 = vector.load %arg6[%c0_14, %c0_15] : memref<4x128xf32, #tpu.memory_space<vmem>>, vector<4x128xf32>
    %cst_16 = arith.constant dense<0.000000e+00> : vector<16x128xf32>
    %14 = tpu.matmul %10, %13, %cst_16 {dimension_numbers = #tpu.dot_dimension_numbers<[1], [0], [0], [1], [0, 0, 1, 1], [], []>} : vector<16x4xf32>, vector<4x128xf32>, vector<16x128xf32> -> vector<16x128xf32>
    %15 = arith.addf %12, %14 : vector<16x128xf32>
    %c0_17 = arith.constant 0 : index
    %c0_18 = arith.constant 0 : index
    %16 = vector.load %arg7[%c0_17, %c0_18] : memref<1x128xf32, #tpu.memory_space<vmem>>, vector<1x128xf32>
    %17 = vector.broadcast %16 : vector<1x128xf32> to vector<16x128xf32>
    %18 = arith.addf %15, %17 : vector<16x128xf32>
    %19 = vector.broadcast %3 : vector<16x1xf32> to vector<16x128xf32>
    %20 = arith.mulf %18, %19 : vector<16x128xf32>
    %cst_19 = arith.constant 0.000000e+00 : f32
    %21 = vector.broadcast %cst_19 : f32 to vector<16x128xf32>
    %22 = arith.maximumf %20, %21 : vector<16x128xf32>
    %c0_20 = arith.constant 0 : index
    %c0_21 = arith.constant 0 : index
    %23 = vector.load %arg8[%c0_20, %c0_21] : memref<128x256xf32, #tpu.memory_space<vmem>>, vector<128x256xf32>
    %cst_22 = arith.constant dense<0.000000e+00> : vector<16x256xf32>
    %24 = tpu.matmul %22, %23, %cst_22 {dimension_numbers = #tpu.dot_dimension_numbers<[1], [0], [0], [1], [0, 0, 1, 1], [], []>} : vector<16x128xf32>, vector<128x256xf32>, vector<16x256xf32> -> vector<16x256xf32>
    %25 = vector.extract_strided_slice %24 {offsets = [0, 0], sizes = [16, 128], strides = [1, 1]} : vector<16x256xf32> to vector<16x128xf32>
    %26 = vector.shape_cast %25 : vector<16x128xf32> to vector<1x16x128xf32>
    %27 = vector.extract_strided_slice %24 {offsets = [0, 128], sizes = [16, 128], strides = [1, 1]} : vector<16x256xf32> to vector<16x128xf32>
    %28 = vector.shape_cast %27 : vector<16x128xf32> to vector<1x16x128xf32>
    %c0_23 = arith.constant 0 : index
    %c0_24 = arith.constant 0 : index
    %c0_25 = arith.constant 0 : index
    %29 = vector.load %arg2[%c0_23, %c0_24, %c0_25] : memref<1x16x16xbf16, #tpu.memory_space<vmem>>, vector<1x16x16xbf16>
    %30 = arith.extf %29 : vector<1x16x16xbf16> to vector<1x16x16xf32>
    "tpu.trace_start"() <{level = 10 : i32, message = "bij,bjc->bic"}> : () -> ()
    %cst_26 = arith.constant dense<0.000000e+00> : vector<1x16x128xf32>
    %31 = tpu.matmul %30, %26, %cst_26 {dimension_numbers = #tpu.dot_dimension_numbers<[2], [1], [1], [2], [0, 0, 0, 1, 1, 2], [0], [0]>} : vector<1x16x16xf32>, vector<1x16x128xf32>, vector<1x16x128xf32> -> vector<1x16x128xf32>
    "tpu.trace_stop"() : () -> ()
    %32 = vector.broadcast %1 : vector<1x16x1xf32> to vector<1x16x128xf32>
    %33 = arith.mulf %31, %32 : vector<1x16x128xf32>
    %34 = arith.addf %33, %28 : vector<1x16x128xf32>
    %c0_27 = arith.constant 0 : index
    %c0_28 = arith.constant 0 : index
    %35 = vector.load %arg9[%c0_27, %c0_28] : memref<1x128xf32, #tpu.memory_space<vmem>>, vector<1x128xf32>
    %36 = vector.shape_cast %35 : vector<1x128xf32> to vector<1x1x128xf32>
    %37 = vector.broadcast %36 : vector<1x1x128xf32> to vector<1x16x128xf32>
    %38 = arith.addf %34, %37 : vector<1x16x128xf32>
    %39 = vector.broadcast %2 : vector<1x16x1xf32> to vector<1x16x128xf32>
    %40 = arith.mulf %38, %39 : vector<1x16x128xf32>
    %cst_29 = arith.constant 0.000000e+00 : f32
    %41 = vector.broadcast %cst_29 : f32 to vector<1x16x128xf32>
    %42 = arith.maximumf %40, %41 : vector<1x16x128xf32>
    %43 = vector.extract_strided_slice %42 {offsets = [0, 0, 0], sizes = [1, 16, 8], strides = [1, 1, 1]} : vector<1x16x128xf32> to vector<1x16x8xf32>
    %c0_30 = arith.constant 0 : index
    %c0_31 = arith.constant 0 : index
    %c0_32 = arith.constant 0 : index
    %44 = vector.load %arg10[%c0_30, %c0_31, %c0_32] : memref<1x16x8xf32, #tpu.memory_space<vmem>>, vector<1x16x8xf32>
    tpu.vector_store %arg10[%c0_30, %c0_31, %c0_32], %43 {strides = array<i32>} : memref<1x16x8xf32, #tpu.memory_space<vmem>>, vector<1x16x8xf32>,
    return
  }
  func.func @transform_0(%arg0: i32) -> (i32, i32, i32) {
    %c0_i32 = arith.constant 0 : i32
    %c0_i32_0 = arith.constant 0 : i32
    %c0_i32_1 = arith.constant 0 : i32
    return %arg0, %c0_i32, %c0_i32_0 : i32, i32, i32
  }
  func.func @transform_1(%arg0: i32) -> (i32, i32, i32) {
    %c0_i32 = arith.constant 0 : i32
    %c0_i32_0 = arith.constant 0 : i32
    %c0_i32_1 = arith.constant 0 : i32
    return %arg0, %c0_i32, %c0_i32_0 : i32, i32, i32
  }
  func.func @transform_2(%arg0: i32) -> (i32, i32, i32) {
    %c0_i32 = arith.constant 0 : i32
    %c0_i32_0 = arith.constant 0 : i32
    %c0_i32_1 = arith.constant 0 : i32
    return %arg0, %c0_i32, %c0_i32_0 : i32, i32, i32
  }
  func.func @transform_3(%arg0: i32) -> (i32, i32, i32) {
    %c0_i32 = arith.constant 0 : i32
    %c0_i32_0 = arith.constant 0 : i32
    %c0_i32_1 = arith.constant 0 : i32
    return %arg0, %c0_i32, %c0_i32_0 : i32, i32, i32
  }
  func.func @transform_4(%arg0: i32) -> (i32, i32) {
    %c0_i32 = arith.constant 0 : i32
    %c0_i32_0 = arith.constant 0 : i32
    %c0_i32_1 = arith.constant 0 : i32
    return %c0_i32, %c0_i32_0 : i32, i32
  }
  func.func @transform_5(%arg0: i32) -> (i32, i32) {
    %c0_i32 = arith.constant 0 : i32
    %c0_i32_0 = arith.constant 0 : i32
    %c0_i32_1 = arith.constant 0 : i32
    return %c0_i32, %c0_i32_0 : i32, i32
  }
  func.func @transform_6(%arg0: i32) -> (i32, i32) {
    %c0_i32 = arith.constant 0 : i32
    %c0_i32_0 = arith.constant 0 : i32
    %c0_i32_1 = arith.constant 0 : i32
    return %c0_i32, %c0_i32_0 : i32, i32
  }
  func.func @transform_7(%arg0: i32) -> (i32, i32) {
    %c0_i32 = arith.constant 0 : i32
    %c0_i32_0 = arith.constant 0 : i32
    %c0_i32_1 = arith.constant 0 : i32
    return %c0_i32, %c0_i32_0 : i32, i32
  }
  func.func @transform_8(%arg0: i32) -> (i32, i32) {
    %c0_i32 = arith.constant 0 : i32
    %c0_i32_0 = arith.constant 0 : i32
    %c0_i32_1 = arith.constant 0 : i32
    return %c0_i32, %c0_i32_0 : i32, i32
  }
  func.func @transform_9(%arg0: i32) -> (i32, i32, i32) {
    %c0_i32 = arith.constant 0 : i32
    %c0_i32_0 = arith.constant 0 : i32
    %c0_i32_1 = arith.constant 0 : i32
    return %arg0, %c0_i32, %c0_i32_0 : i32, i32, i32
  }
}

</mosaic_0001>

<bundles_post_ra>
// kernel: tpu_custom_call.1
= control target key start
LH: loop header
LB: loop body
LE: loop exit
PB: predicated region body
PF: predicated region fallthrough
CT: control target
= control target key end

     0   :  { %14 = vsyncpa [#allocation3], 0  ;;  %s1268_s30 = smov 0   ;;  %s1371_s0 = inlined_call_operand.vmem [shape: f32[2,16,4], index: 0, kind: input, shape index: {}]   ;;  %s1372_s1 = inlined_call_operand.vmem [shape: bf16[2,16,16], index: 1, kind: input, shape index: {}]   ;;  %s1373_s2 = inlined_call_operand.vmem [shape: f32[2,16,1], index: 2, kind: input, shape index: {}]   ;;  %s1374_s3 = inlined_call_operand.vmem [shape: f32[2,16,1], index: 3, kind: input, shape index: {}]   ;;  %s1375_s4 = inlined_call_operand.vmem [shape: f32[4,128], index: 4, kind: input, shape index: {}]   ;;  %s1376_s5 = inlined_call_operand.vmem [shape: f32[4,128], index: 5, kind: input, shape index: {}]   ;;  %s1377_s6 = inlined_call_operand.vmem [shape: f32[1,128], index: 6, kind: input, shape index: {}]   ;;  %s1378_s7 = inlined_call_operand.hbm [shape: f32[128,256], index: 7, kind: input, shape index: {}]   ;;  %s1379_s8 = inlined_call_operand.vmem [shape: f32[1,128], index: 8, kind: input, shape index: {}]   ;;  %s1380_s9 = inlined_call_operand.vmem [shape: f32[2,16,8], index: 9, kind: output, shape index: {}]  }
   0x1 LB: > { %s1274_s10 = sadd.s32 4294967295, %s1211_s30   ;;  %p1026_p0 = scmp.ge.s32.totalorder %s1211_s30, 1  ;;  %s1211_s30 = sphi %s1268_s30, %s20_s30  }
   0x2   : > { %p260_p1 = scmp.lt.s32.totalorder %s1211_s30, 3  ;;  %s1213_s11 = smov [#allocation2]  }
   0x3   : > { %s281_s12 = sshll.u32 %s1213_s11, 4  ;;  %p1381_p3 = scmp.eq.s32.totalorder %s1274_s10, 0  ;;  %s282_s12 = int_to_ptr.vmem [resolvable:$true] %s281_s12 }
   0x4   : > { %p1278_p2 = pnand %p1026_p0, %p260_p1  ;;  %s1173_s17 = scalar_lea.hbm %s1378_s7, 4096 }
   0x5   : > { %p1174_p6 = scmp.ne.s32.totalorder %s1378_s7, %s1173_s17  ;;  %p1180_p10 = scmp.lt.u32.totalorder %s1173_s17, %s1378_s7 }
   0x6   : > { %s1383_s13 = scalar_select %p1278_p2, 1, 0 }
   0x7   : > { %p1152_p4 = pneg %p1278_p2 }
   0x9   : > { %p1287_p5 = pnand %p1381_p3, %p1152_p4 }
   0xb   : > { %p1175_p7 = pneg %p1287_p5 }
   0xd   : > { %p1176_p8 = pnand %p1175_p7, %p1174_p6 }
   0xf   : > { %p1177_p9 = pneg %p1176_p8 }
  0x11   : > { %p1182_p11 = pnand %p1180_p10, %p1177_p9 }
  0x13   : > { %1185 = shalt.err (!%p1182_p11)
}
  0x14   : > { %s1186_s22 = scalar_lea.vmem %s282_s12, 4096  ;;  %p1194_p1 = scmp.lt.s32.totalorder %s282_s12, %s282_s12 }
  0x15   : > { %p1187_p12 = scmp.ne.s32.totalorder %s282_s12, %s1186_s22  ;;  %p1195_p4 = scmp.lt.s32.totalorder %s1186_s22, %s1186_s22 }
  0x17   : > { %p1189_p13 = pnand %p1187_p12, %p1175_p7  ;;  %p1196_p3 = por %p1195_p4, %p1194_p1 }
  0x19   : > { %p1190_p0 = pneg %p1189_p13 }
  0x1b   : > { %p1197_p2 = pnand %p1196_p3, %p1190_p0 }
  0x1d   : > { %1200 = shalt.err (!%p1197_p2)
}
  0x1e   : > { %s1214_s23 = smov 256   ;;  %s1215_s24 = smov 16  }
  0x1f   : > { %1155 = dma.hbm_to_vmem [thread:$0]  (!%p1287_p5), %s1378_s7, 4096, %s282_s12, [#allocation3], %s1214_s23, %s1214_s23, %s1215_s24  }
  0x20   : > { %p1385_p6 = scmp.ne.s32.totalorder %s1383_s13, 0 }
  0x21   : > { %p1386_p8 = scmp.eq.s32.totalorder (!%p1385_p6), %s1274_s10, 0 }
  0x22   : > { %332 = sbr.rel (%p1385_p6) target bundleno = 935 (0x3a7), region = 56 }
  0x29   : > { %1206 = dma.done.wait (%p1386_p8), [#allocation3], 4096   ;;  %p1387_p7 = pmov %p1386_p8 }
  0x2a   : > { %p383_p2 = scmp.lt.s32.totalorder %s1274_s10, 1  ;;  %v1216_v0 = vmov 0   ;;  %vm418_vm0 = vcmask 130048   ;;  %v513_v7 = vld [vmem:[%s1376_s5] sm:$0xf]  ;;  %vm521_vm1 = vcmask 1043456  }
  0x2b   : > { %1208 = vsyncadd (%p1387_p7), [#allocation3], 4294963200  ;;  %1171 = vset.pattern.permute.xlu0 %v1216_v0  ;;  %1172 = vset.pattern.permute.xlu1 %v1216_v0  ;;  %vm514_vm2 = vcmask 31744   ;;  %v512_v10 = vld [vmem:[%s1375_s4] sm:$0xf]  ;;  %v708_v11 = vld [vmem:[#allocation2 + $0x8] sm:$0xff] }
  0x2c   : > { %s1389_s10 = smov (!%p383_p2, %s1274_s10), 1  ;;  %v710_v12 = vld [vmem:[#allocation2 + $0x18] sm:$0xff]  ;;  %v707_v13 = vld [vmem:[#allocation2] sm:$0xff]  ;;  %v709_v17 = vld [vmem:[#allocation2 + $0x10] sm:$0xff]  ;;  %vm918_vm3 = vcmask 64512  }
  0x2d   : > { %s1315_s27 = sshll.u32 %s1389_s10, 4  ;;  %s1056_s28 = sshll.u32 %s1389_s10, 3  ;;  %v1110_v16 = vpack.c.bf16 %v710_v12, %v708_v11  ;;  %v1112_v18 = vpack.c.bf16 %v709_v17, %v707_v13  ;;  %v712_v19 = vld [vmem:[#allocation2 + $0x28] sm:$0xff]  ;;  %v714_v20 = vld [vmem:[#allocation2 + $0x38] sm:$0xff]  ;;  %v711_v21 = vld [vmem:[#allocation2 + $0x20] sm:$0xff] }
  0x2e   : > { %s387_s12 = scalar_lea.vmem %s1371_s0, %s1315_s27  ;;  %s392_s15 = scalar_lea.vmem %s1372_s1, %s1056_s28  ;;  %v1114_v22 = vpack.c.bf16 %v714_v20, %v712_v19  ;;  %v713_v23 = vld [vmem:[#allocation2 + $0x30] sm:$0xff]  ;;  %v716_v24 = vld [vmem:[#allocation2 + $0x48] sm:$0xff]  ;;  %v718_v25 = vld [vmem:[#allocation2 + $0x58] sm:$0xff] }
  0x2f   : > { %s397_s18 = scalar_lea.vmem %s1373_s2, %s1315_s27  ;;  %v408_v1 = vld [vmem:[%s387_s12] sm:$0xff]  ;;  %v409_v2 = vld [vmem:[%s387_s12 + $0x8] sm:$0xff]  ;;  %s402_s24 = scalar_lea.vmem %s1374_s3, %s1315_s27  ;;  %1111 = vmatprep.subr.bf16.mxu0 %v1110_v16  ;;  %v1116_v26 = vpack.c.bf16 %v713_v23, %v711_v21  ;;  %v1118_v27 = vpack.c.bf16 %v718_v25, %v716_v24  ;;  %v717_v29 = vld [vmem:[#allocation2 + $0x50] sm:$0xff] }
  0x30   : > { %v1328_v3 = vld [vmem:[%s392_s15] sm:$0xff]   ;;  %v1106_v4 = vpack.c.bf16 %v409_v2, %v408_v1  ;;  %v411_v9 = vld [vmem:[%s397_s18 + $0x8] sm:$0xff]  ;;  %1113 = vmatpush1.bf16.msra.mxu0 %v1112_v18  ;;  %v722_v31 = vld [vmem:[#allocation2 + $0x78] sm:$0xff]  ;;  %s407_s13 = scalar_lea.vmem %s1380_s9, %s1315_s27 }
  0x31   : > { %v1062_v5 = vunpack.c.l.bf16 %v1328_v3  ;;  %v410_v6 = vld [vmem:[%s397_s18] sm:$0xff]  ;;  %v1063_v8 = vunpack.c.h.bf16 %v1328_v3  ;;  %v413_v15 = vld [vmem:[%s402_s24 + $0x8] sm:$0xff]  ;;  %1115 = vmatprep.subr.bf16.mxu0 %v1114_v22  ;;  %v721_v35 = vld [vmem:[#allocation2 + $0x70] sm:$0xff] }
  0x32   : > { %502 = vperm.xlu0 %1171, %v410_v6   ;;  %1107 = vmatprep.subr.bf16.mxu1 %v1106_v4  ;;  %v412_v14 = vld [vmem:[%s402_s24] sm:$0xff]  ;;  %v720_v30 = vld [vmem:[#allocation2 + $0x68] sm:$0xff]  ;;  %v726_v37 = vld [vmem:[#allocation2 + $0x98] sm:$0xff] }
  0x33   : > { %1086 = vmatprep.mubr.msk.f32.mxu1 %vm418_vm0, %v1062_v5  ;;  %1109 = vmatpush3.bf16.msra.mxu1 %v1106_v4  ;;  %v715_v28 = vld [vmem:[#allocation2 + $0x40] sm:$0xff]  ;;  %v1122_v33 = vpack.c.bf16 %v722_v31, %v720_v30  ;;  %v724_v36 = vld [vmem:[#allocation2 + $0x88] sm:$0xff]  ;;  %v725_v41 = vld [vmem:[#allocation2 + $0x90] sm:$0xff]  ;;  %v1217_v4 = vmov 0.0  }
  0x34   : > { %1089 = vmatprep.subr.msk.mxu1 %vm521_vm1, %v513_v7  ;;  %695 = vperm.xlu1 %1172, %v412_v14   ;;  %v1120_v32 = vpack.c.bf16 %v717_v29, %v715_v28  ;;  %v719_v34 = vld [vmem:[#allocation2 + $0x60] sm:$0xff]  ;;  %v1126_v39 = vpack.c.bf16 %v726_v37, %v724_v36  ;;  %v728_v42 = vld [vmem:[#allocation2 + $0xa8] sm:$0xff]  ;;  %v730_v43 = vld [vmem:[#allocation2 + $0xb8] sm:$0xff] }
  0x35   : > { %1117 = vmatpush1.bf16.msra.mxu0 %v1116_v26  ;;  %v1124_v38 = vpack.c.bf16 %v721_v35, %v719_v34  ;;  %v723_v40 = vld [vmem:[#allocation2 + $0x80] sm:$0xff]  ;;  %v1130_v45 = vpack.c.bf16 %v730_v43, %v728_v42  ;;  %v729_v47 = vld [vmem:[#allocation2 + $0xb0] sm:$0xff]  ;;  %v732_v55 = vld [vmem:[#allocation2 + $0xc8] sm:$0xff]  ;;  %803 = vmatprep.mubr.f32.mxu0 %v1217_v4 }
  0x36   : > { %507 = vperm.xlu0 %1171, %v411_v9   ;;  %1087 = vmatmul.mubr.msk.f32.vlgmr.msra.gmra.mrb[0].mxu1 %vm418_vm0, %v1063_v8  ;;  %v1128_v44 = vpack.c.bf16 %v725_v41, %v723_v40  ;;  %v727_v46 = vld [vmem:[#allocation2 + $0xa0] sm:$0xff]  ;;  %v734_v56 = vld [vmem:[#allocation2 + $0xd8] sm:$0xff]  ;;  %v733_v59 = vld [vmem:[#allocation2 + $0xd0] sm:$0xff] }
  0x37   : > { %1090 = vmatpush3.msk.msra.mxu1 %vm521_vm1, %v513_v7  ;;  %1091 = vmatprep.mubr.msk.f32.mxu1 %vm514_vm2, %v408_v1  ;;  %v1132_v48 = vpack.c.bf16 %v729_v47, %v727_v46  ;;  %v1134_v57 = vpack.c.bf16 %v734_v56, %v732_v55  ;;  %v731_v58 = vld [vmem:[#allocation2 + $0xc0] sm:$0xff]  ;;  %v736_v61 = vld [vmem:[#allocation2 + $0xe8] sm:$0xff]  ;;  %v738_v62 = vld [vmem:[#allocation2 + $0xf8] sm:$0xff] }
  0x38   : > { %1094 = vmatprep.subr.msk.mxu1 %vm521_vm1, %v512_v10  ;;  %700 = vperm.xlu1 %1172, %v413_v15   ;;  %v1136_v60 = vpack.c.bf16 %v733_v59, %v731_v58  ;;  %v1138_v63 = vpack.c.bf16 %v738_v62, %v736_v61  ;;  %v735_v0 = vld [vmem:[#allocation2 + $0xe0] sm:$0xff]  ;;  %v737_v1 = vld [vmem:[#allocation2 + $0xf0] sm:$0xff] }
  0x39   : > { %1119 = vmatprep.subr.bf16.mxu0 %v1118_v27  ;;  %v1052_v25 = vld [vmem:[%s1379_s8] ss:$0 sm:$0xff] }
  0x3a   : > { %1092 = vmatmul.mubr.msk.f32.vlgmr.msra.gmra.mrb[2].mxu1 %vm514_vm2, %v409_v2  ;;  %1121 = vmatpush1.bf16.msra.mxu0 %v1120_v32  ;;  %v1140_v2 = vpack.c.bf16 %v737_v1, %v735_v0 }
  0x3b   : > { %1095 = vmatpush3.msk.msra.mxu1 %vm521_vm1, %v512_v10  ;;  %1123 = vmatprep.subr.bf16.mxu0 %v1122_v33 }
  0x3e   : > { %1125 = vmatpush1.bf16.msra.mxu0 %v1124_v38 }
  0x3f   : > { %1127 = vmatprep.subr.bf16.mxu0 %v1126_v39 }
  0x42   : > { %1129 = vmatpush1.bf16.msra.mxu0 %v1128_v44 }
  0x43   : > { %1131 = vmatprep.subr.bf16.mxu0 %v1130_v45 }
  0x46   : > { %1133 = vmatpush1.bf16.msra.mxu0 %v1132_v48 }
  0x47   : > { %1135 = vmatprep.subr.bf16.mxu0 %v1134_v57 }
  0x4a   : > { %1137 = vmatpush1.bf16.msra.mxu0 %v1136_v60 }
  0x4b   : > { %1139 = vmatprep.subr.bf16.mxu0 %v1138_v63 }
  0x4e   : > { %1141 = vmatpush1.bf16.msra.mxu0 %v1140_v2 }
  0xb1   : > { %v503_v49 = vpop.permute.xlu0 %502 }
  0xb3   : > { %v696_v6 = vpop.permute.xlu1 %695 }
  0xb5   : > { %v508_v52 = vpop.permute.xlu0 %507 }
  0xb7   : > { %v701_v12 = vpop.permute.xlu1 %700 }
 0x109   : > { %v1088_v50 = vpop.f32.mrb[0].mxu1 }
 0x10a   : > { %v491_v51 = vpop.f32.mrb[1].mxu1  ;;  %v511_v54 = vmul.f32 %v1088_v50, %v508_v52 }
 0x10b   : > { %v510_v53 = vmul.f32 %v503_v49, %v491_v51 }
 0x10d   : > { %1096 = vmatprep.mubr.msk.f32.mxu1 %vm514_vm2, %v510_v53 }
 0x10e   : > { %1097 = vmatmul.mubr.msk.f32.vlgmr.msra.gmra.mrb[2].mxu1 %vm514_vm2, %v511_v54 }
 0x10f   : > { %1103 = vmatprep.mubr.msk.f32.mxu1 %vm418_vm0, %v1062_v5  ;;  %v1049_v5 = vld [vmem:[%s1377_s6] ss:$0 sm:$0xff] }
 0x1e1   : > { %v1098_v7 = vpop.f32.mrb[2].mxu1 }
 0x1e2   : > { %v675_v9 = vpop.f32.mrb[3].mxu1  ;;  %v692_v10 = vadd.f32 %v1098_v7, %v1049_v5 }
 0x1e3   : > { %v691_v11 = vadd.f32 %v1049_v5, %v675_v9 }
 0x1e4   : > { %v704_v15 = vmul.f32 %v701_v12, %v692_v10 }
 0x1e5   : > { %v703_v13 = vmul.f32 %v696_v6, %v691_v11 }
 0x1e6   : > { %v706_v16 = vmax.f32 %v704_v15, 0.0 }
 0x1e7   : > { %v705_v14 = vmax.f32 %v703_v13, 0.0 }
 0x1e9   : > { %804 = vmatmul.mubr.f32.vlgmr.msra.gmra.mrb[0].mxu0 %v705_v14 }
 0x1ea   : > { %809 = vmatprep.mubr.f32.mxu0 %v1217_v4 }
 0x1ed   : > { %810 = vmatmul.mubr.f32.gmra.mrb[2].mxu0 %v706_v16 }
 0x2bc   : > { %v805_v17 = vpop.f32.mrb[0].mxu0 }
 0x2bd   : > { %v807_v18 = vpop.f32.mrb[1].mxu0 }
 0x2c0   : > { %v811_v19 = vpop.f32.mrb[2].mxu0 }
 0x2c1   : > { %v1142_v20 = vpack.c.bf16 %v811_v19, %v805_v17  ;;  %v813_v21 = vpop.f32.mrb[3].mxu0 }
 0x2c3   : > { %1143 = vmatprep.subr.bf16.mxu1 %v1142_v20 }
 0x2c4   : > { %1145 = vmatpush3.bf16.msra.mxu1 %v1142_v20 }
 0x2c7   : > { %1104 = vmatmul.mubr.msk.f32.vlgmr.msra.gmra.mrb[4].mxu1 %vm418_vm0, %v1063_v8 }
 0x39a   : > { %v1105_v22 = vpop.f32.mrb[4].mxu1 }
 0x39b   : > { %v902_v23 = vmul.f32 %v1105_v22, %v508_v52  ;;  %v892_v24 = vpop.f32.mrb[5].mxu1 }
 0x39c   : > { %v901_v26 = vmul.f32 %v892_v24, %v503_v49 }
 0x39d   : > { %v904_v27 = vadd.f32 %v902_v23, %v813_v21 }
 0x39e   : > { %v903_v28 = vadd.f32 %v901_v26, %v807_v18 }
 0x39f   : > { %v913_v29 = vadd.f32 %v1052_v25, %v904_v27 }
 0x3a0   : > { %v912_v30 = vadd.f32 %v1052_v25, %v903_v28 }
 0x3a1   : > { %v915_v31 = vmul.f32 %v913_v29, %v701_v12 }
 0x3a2   : > { %v914_v3 = vmul.f32 %v912_v30, %v696_v6 }
 0x3a3   : > { %v917_v8 = vmax.f32 %v915_v31, 0.0 }
 0x3a4   : > { %v916_v32 = vmax.f32 %v914_v3, 0.0 }
 0x3a5   : > { %920 = vst.msk [vmem:[%s407_s13 + $0x8] sm:$0xff] %vm918_vm3, %v917_v8 }
 0x3a6   : > { %919 = vst.msk [vmem:[%s407_s13] sm:$0xff] %vm918_vm3, %v916_v32 }
 0x3a7 PF: > { %s20_s30 = sadd.s32 1, %s1211_s30  }
 0x3a8   : > { %p17_p3 = scmp.ge.s32.totalorder %s20_s30, 4  }
 0x3aa   :  { %19 = sbr.rel (!%p17_p3) target bundleno = 1 (0x1), region = 100 }
 0x3b1   :  { %942 = vsyncpa [#allocation3], 1 }
 0x3b2   :  { %944 = vsyncpa [#allocation3 + $0x1], 1 }

</bundles_post_ra>
